<compile_context>
chip_gen: v6e
topology: v6e:2x2x1
jax: 0.10.0
libtpu: 0.0.40
codegen_flags: <defaults>
</compile_context>

<pallas_src>
import functools

import jax
import jax.numpy as jnp
from jax import lax
from jax.experimental import pallas as pl
from jax.experimental.pallas import tpu as pltpu


def _focal_loss_kernel(logits_ref, targets_ref, loss_ref, *, alpha, gamma):
    """Per-row focal loss for one (tile_n, C) tile.

    logits_ref:  (tile_n, C) tile in native dtype (f32 / bf16)
    targets_ref: (tile_n, 1) int32 class indices
    loss_ref:    (tile_n, 1) f32 per-row focal loss (output)
    """
    x = logits_ref[...].astype(jnp.float32)            # (tn, C)
    t = targets_ref[...]                                # (tn, 1) int32

    # Numerically stable log-sum-exp along the class axis.
    m = jnp.max(x, axis=1, keepdims=True)               # (tn, 1)
    shifted = x - m                                      # (tn, C)
    s = jnp.sum(jnp.exp(shifted), axis=1, keepdims=True)  # (tn, 1)

    # Select the target-class shifted logit via an iota compare
    # (equivalent to the scatter_-built one-hot, but only the selected
    #  column survives, so all transcendentals below are per-row).
    col_ids = lax.broadcasted_iota(jnp.int32, x.shape, 1)
    one_hot = col_ids == t                               # (tn, C) bool
    shifted_t = jnp.sum(jnp.where(one_hot, shifted, 0.0),
                        axis=1, keepdims=True)           # (tn, 1)

    log_p_t = shifted_t - jnp.log(s)                     # log softmax(target)
    p_t = jnp.exp(log_p_t)                               # softmax(target)
    one_minus = 1.0 - p_t

    # Focal weight: avoid exp(gamma*log(.)) for the common integer gammas.
    if gamma == 2.0:
        fw = one_minus * one_minus
    elif gamma == 1.0:
        fw = one_minus
    elif gamma == 0.0:
        fw = jnp.ones_like(one_minus)
    else:
        fw = jnp.power(one_minus, gamma)

    loss_ref[...] = (-alpha) * fw * log_p_t              # (tn, 1) f32


def _round_up(x, m):
    return ((x + m - 1) // m) * m


def _choose_tile_n(n, c, logits_itemsize,
                   vmem_budget_bytes=12 * 1024 * 1024):
    """Largest row tile whose double-buffered working set fits the budget.

    Budget is conservative (<= 12 MiB) so it stays well under v7x's 64 MiB
    physical / 32 MiB scoped VMEM as well as v5e/v6e defaults.
    """
    per_row = 2 * c * logits_itemsize   # double-buffered logits tile
    per_row += 2 * 4                    # double-buffered int32 targets
    per_row += 2 * 4                    # double-buffered f32 per-row output
    tile_n = int(vmem_budget_bytes // max(per_row, 1))
    tile_n = max(16, min(tile_n, 2048))
    tile_n = (tile_n // 16) * 16        # bf16 sublane packing -> multiple of 16
    tile_n = min(tile_n, _round_up(n, 16))
    return tile_n


def focal_loss(logits, targets, *, alpha=1.0, gamma=2.0, reduction="mean"):
    """JAX/Pallas equivalent of FocalLoss.forward for 2-D logits.

    logits:  (N, C) float array (f32 or bf16 -- kept in native dtype)
    targets: (N,)   int array of class indices
    """
    N, C = logits.shape
    itemsize = jnp.dtype(logits.dtype).itemsize
    tile_n = _choose_tile_n(N, C, itemsize)

    # Pad the batch up to a tile multiple; padded rows are computed but
    # discarded before the reduction (zeros + class 0 => finite values).
    n_pad = _round_up(N, tile_n)
    if n_pad != N:
        logits = jnp.pad(logits, ((0, n_pad - N), (0, 0)))
        targets = jnp.pad(targets, ((0, n_pad - N),))
    targets2d = targets.astype(jnp.int32).reshape(n_pad, 1)

    kernel = functools.partial(_focal_loss_kernel, alpha=float(alpha),
                               gamma=float(gamma))

    per_row = pl.pallas_call(
        kernel,
        out_shape=jax.ShapeDtypeStruct((n_pad, 1), jnp.float32),
        grid_spec=pltpu.PrefetchScalarGridSpec(
            num_scalar_prefetch=0,
            grid=(n_pad // tile_n,),
            in_specs=[
                pl.BlockSpec((tile_n, C), lambda i: (i, 0)),
                pl.BlockSpec((tile_n, 1), lambda i: (i, 0)),
            ],
            out_specs=pl.BlockSpec((tile_n, 1), lambda i: (i, 0)),
        ),
        compiler_params=pltpu.CompilerParams(
            dimension_semantics=("parallel",),      # independent tiles (megacore OK)
            vmem_limit_bytes=32 * 1024 * 1024,      # safe on v5e/v6e/v7x
        ),
    )(logits, targets2d)

    per_row = per_row[:N, 0]                         # drop padded rows
    total = jnp.sum(per_row)                         # XLA tree-reduce in f32

    if reduction == "mean":
        return total / N
    elif reduction == "sum":
        return total
    else:
        # TODO(synk): reduction='none' returns the full (N, C) focal-loss map
        # in the PyTorch module; this kernel only produces per-row losses.
        raise NotImplementedError("reduction='none' not implemented")


def _reference_focal_loss(logits, targets, alpha=1.0, gamma=2.0):
    """Plain-JAX reference mirroring the PyTorch module (reduction='mean')."""
    probs = jax.nn.softmax(logits.astype(jnp.float32), axis=1)
    one_hot = jax.nn.one_hot(targets, logits.shape[1], dtype=jnp.float32)
    fw = jnp.power(1.0 - probs, gamma)
    fl = -alpha * fw * one_hot * jnp.log(probs)
    return fl.sum() / logits.shape[0]


if __name__ == "__main__":
    key = jax.random.PRNGKey(0)
    k1, k2 = jax.random.split(key)

    # Small shapes consistent with the module: batch=16, classes=32.
    N, C = 16, 32
    logits = jax.random.normal(k1, (N, C), dtype=jnp.float32)
    targets = jax.random.randint(k2, (N,), 0, C, dtype=jnp.int32)

    out = focal_loss(logits, targets, alpha=1.0, gamma=2.0, reduction="mean")
    out = jax.block_until_ready(out)
    ref = _reference_focal_loss(logits, targets)
    assert jnp.allclose(out, ref, rtol=2e-5, atol=2e-5), (out, ref)

    # Ragged batch (exercises the padding path) + 'sum' reduction.
    N2 = 20
    logits2 = jax.random.normal(k1, (N2, C), dtype=jnp.float32)
    targets2 = jax.random.randint(k2, (N2,), 0, C, dtype=jnp.int32)
    out2 = jax.block_until_ready(
        focal_loss(logits2, targets2, alpha=1.0, gamma=2.0, reduction="sum"))
    ref2 = _reference_focal_loss(logits2, targets2) * N2
    assert jnp.allclose(out2, ref2, rtol=2e-5, atol=2e-5), (out2, ref2)

    # Native bf16 logits: no wrapper upcast, kernel casts to f32 internally.
    logits_bf16 = logits.astype(jnp.bfloat16)
    out3 = jax.block_until_ready(
        focal_loss(logits_bf16, targets, alpha=1.0, gamma=2.0, reduction="mean"))
    ref3 = _reference_focal_loss(logits_bf16.astype(jnp.float32), targets)
    assert jnp.allclose(out3, ref3, rtol=2e-5, atol=2e-5), (out3, ref3)

    print("KERNEL_OK")
</pallas_src>

<mosaic_0001>
module attributes {stable_mosaic.version = 11 : i64} {
  func.func @_focal_loss_kernel(%arg0: i32, %arg1: memref<16x32xf32, #tpu.memory_space<vmem>>, %arg2: memref<16x1xi32, #tpu.memory_space<vmem>>, %arg3: memref<16x1xf32, #tpu.memory_space<vmem>>) attributes {dimension_semantics = [#tpu.dimension_semantics<parallel>], iteration_bounds = array<i64: 1>, scalar_prefetch = 0 : i64, scratch_operands = 0 : i64, tpu.core_type = #tpu.core_type<tc>, window_params = [{transform_indices = @transform_0, window_bounds = array<i64: 16, 32>}, {transform_indices = @transform_1, window_bounds = array<i64: 16, 1>}, {transform_indices = @transform_2, window_bounds = array<i64: 16, 1>}]} {
    %c0 = arith.constant 0 : index
    %c0_0 = arith.constant 0 : index
    %0 = vector.load %arg1[%c0, %c0_0] : memref<16x32xf32, #tpu.memory_space<vmem>>, vector<16x32xf32>
    %c0_1 = arith.constant 0 : index
    %c0_2 = arith.constant 0 : index
    %1 = vector.load %arg2[%c0_1, %c0_2] : memref<16x1xi32, #tpu.memory_space<vmem>>, vector<16x1xi32>
    %cst = arith.constant dense<0xFF800000> : vector<16xf32>
    %2 = vector.multi_reduction <maximumf>, %0, %cst [1] : vector<16x32xf32> to vector<16xf32>
    %3 = vector.shape_cast %2 : vector<16xf32> to vector<16x1xf32>
    %4 = vector.broadcast %3 : vector<16x1xf32> to vector<16x32xf32>
    %5 = arith.subf %0, %4 : vector<16x32xf32>
    %6 = math.exp %5 : vector<16x32xf32>
    %cst_3 = arith.constant dense<0.000000e+00> : vector<16xf32>
    %7 = vector.multi_reduction <add>, %6, %cst_3 [1] : vector<16x32xf32> to vector<16xf32>
    %8 = vector.shape_cast %7 : vector<16xf32> to vector<16x1xf32>
    %9 = tpu.iota {dimensions = array<i32: 1>} : vector<16x32xi32>
    %10 = vector.broadcast %1 : vector<16x1xi32> to vector<16x32xi32>
    %11 = arith.cmpi eq, %9, %10 : vector<16x32xi32>
    %cst_4 = arith.constant 0.000000e+00 : f32
    %12 = vector.broadcast %cst_4 : f32 to vector<16x32xf32>
    %13 = arith.select %11, %5, %12 : vector<16x32xi1>, vector<16x32xf32>
    %cst_5 = arith.constant dense<0.000000e+00> : vector<16xf32>
    %14 = vector.multi_reduction <add>, %13, %cst_5 [1] : vector<16x32xf32> to vector<16xf32>
    %15 = vector.shape_cast %14 : vector<16xf32> to vector<16x1xf32>
    %16 = math.log %8 : vector<16x1xf32>
    %17 = arith.subf %15, %16 : vector<16x1xf32>
    %18 = math.exp %17 : vector<16x1xf32>
    %cst_6 = arith.constant 1.000000e+00 : f32
    %19 = vector.broadcast %cst_6 : f32 to vector<16x1xf32>
    %20 = arith.subf %19, %18 : vector<16x1xf32>
    %21 = arith.mulf %20, %20 : vector<16x1xf32>
    %cst_7 = arith.constant -1.000000e+00 : f32
    %22 = vector.broadcast %cst_7 : f32 to vector<16x1xf32>
    %23 = arith.mulf %22, %21 : vector<16x1xf32>
    %24 = arith.mulf %23, %17 : vector<16x1xf32>
    %c0_8 = arith.constant 0 : index
    %c0_9 = arith.constant 0 : index
    %25 = vector.load %arg3[%c0_8, %c0_9] : memref<16x1xf32, #tpu.memory_space<vmem>>, vector<16x1xf32>
    tpu.vector_store %arg3[%c0_8, %c0_9], %24 {strides = array<i32>} : memref<16x1xf32, #tpu.memory_space<vmem>>, vector<16x1xf32>,
    return
  }
  func.func @transform_0(%arg0: i32) -> (i32, i32) {
    %c0_i32 = arith.constant 0 : i32
    %c0_i32_0 = arith.constant 0 : i32
    return %arg0, %c0_i32 : i32, i32
  }
  func.func @transform_1(%arg0: i32) -> (i32, i32) {
    %c0_i32 = arith.constant 0 : i32
    %c0_i32_0 = arith.constant 0 : i32
    return %arg0, %c0_i32 : i32, i32
  }
  func.func @transform_2(%arg0: i32) -> (i32, i32) {
    %c0_i32 = arith.constant 0 : i32
    %c0_i32_0 = arith.constant 0 : i32
    return %arg0, %c0_i32 : i32, i32
  }
}

</mosaic_0001>

<bundles_post_ra>
// kernel: tpu_custom_call.1
= control target key start
LH: loop header
LB: loop body
LE: loop exit
PB: predicated region body
PF: predicated region fallthrough
CT: control target
= control target key end

     0   :  { %vm15_vm0 = vcmask 261120   ;;  %v92_v2 = vmov 0   ;;  %v34_v13 = vlaneseq  ;;  %vm70_vm3 = vcmask 7168   ;;  %s132_s0 = inlined_call_operand.vmem [shape: f32[16,32], index: 0, kind: input, shape index: {}]   ;;  %s133_s1 = inlined_call_operand.vmem [shape: s32[16,1], index: 1, kind: input, shape index: {}]   ;;  %s134_s2 = inlined_call_operand.vmem [shape: f32[16,1], index: 2, kind: output, shape index: {}]  }
   0x1   :  { %v11_v0 = vld [vmem:[%s132_s0] sm:$0xff]  ;;  %v12_v1 = vld [vmem:[%s132_s0 + $0x8] sm:$0xff]  ;;  %78 = vset.pattern.permute.xlu1 %v92_v2  ;;  %79 = vset.pattern.permute.xlu0 %v92_v2 }
   0x2   :  { %v13_v3 = vld [vmem:[%s133_s1] sm:$0xff]  ;;  %v16_v4 = vsel %vm15_vm0, %v11_v0, -inf  ;;  %v14_v5 = vld [vmem:[%s133_s1 + $0x8] sm:$0xff]  ;;  %v19_v6 = vsel %vm15_vm0, %v12_v1, -inf  ;;  %v35_v15 = vand.u32 127, %v34_v13 }
   0x3   :  { %37 = vperm.xlu1 %78, %v13_v3   ;;  %17 = vmax.xlane.f32.xlu0 %v16_v4 }
   0x7   :  { %40 = vperm.xlu1 %78, %v14_v5   ;;  %20 = vmax.xlane.f32.xlu0 %v19_v6 }
  0x7e   :  { %v38_v14 = vpop.permute.xlu1 %37 }
  0x7f   :  { %vm42_vm1 = vcmp.eq.s32.totalorder %v35_v15, %v38_v14 }
  0x82   :  { %v41_v17 = vpop.permute.xlu1 %40 }
  0x83   :  { %vm43_vm2 = vcmp.eq.s32.totalorder %v35_v15, %v41_v17 }
  0x8c   :  { %v18_v7 = vpop.xlane.xlu0 %17 }
  0x8d   :  { %v22_v8 = vsub.f32 %v11_v0, %v18_v7 }
  0x8f   :  { %v24_v9 = vmul.f32 1.442695, %v22_v8  ;;  %v44_v19 = vsel %vm42_vm1, %v22_v8, 0.0 }
  0x90   :  { %v21_v10 = vpop.xlane.xlu0 %20  ;;  %v46_v21 = vsel %vm15_vm0, %v44_v19, 0.0 }
  0x91   :  { %80 = vpow2.f32 %v24_v9  ;;  %v23_v11 = vsub.f32 %v12_v1, %v21_v10 }
  0x93   :  { %v26_v12 = vmul.f32 1.442695, %v23_v11  ;;  %v45_v23 = vsel %vm43_vm2, %v23_v11, 0.0 }
  0x94   :  { %v49_v24 = vsel %vm15_vm0, %v45_v23, 0.0 }
  0x95   :  { %82 = vpow2.f32 %v26_v12 }
  0x9e   :  { %v81_v16 = vpop.eup %80 }
  0x9f   :  { %v28_v18 = vsel %vm15_vm0, %v81_v16, 0.0 }
  0xa0   :  { %29 = vadd.xlane.f32.xlu0 %v28_v18 }
  0xa2   :  { %v83_v20 = vpop.eup %82 }
  0xa3   :  { %v31_v22 = vsel %vm15_vm0, %v83_v20, 0.0 }
  0xa4   :  { %47 = vadd.xlane.f32.xlu0 %v46_v21  ;;  %32 = vadd.xlane.f32.xlu1 %v31_v22 }
  0xa8   :  { %50 = vadd.xlane.f32.xlu0 %v49_v24 }
 0x129   :  { %v30_v25 = vpop.xlane.xlu0 %29 }
 0x12a   :  { %84 = vlog2.f32 %v30_v25 }
 0x12d   :  { %v33_v26 = vpop.xlane.xlu1 %32  ;;  %v48_v28 = vpop.xlane.xlu0 %47 }
 0x12e   :  { %86 = vlog2.f32 %v33_v26 }
 0x131   :  { %v51_v34 = vpop.xlane.xlu0 %50 }
 0x137   :  { %v85_v27 = vpop.eup %84 }
 0x138   :  { %v53_v29 = vmul.f32 0.6931472, %v85_v27 }
 0x13a   :  { %v56_v30 = vsub.f32 %v48_v28, %v53_v29 }
 0x13b   :  { %v87_v31 = vpop.eup %86 }
 0x13c   :  { %v58_v32 = vmul.f32 1.442695, %v56_v30  ;;  %v55_v33 = vmul.f32 0.6931472, %v87_v31 }
 0x13e   :  { %88 = vpow2.f32 %v58_v32  ;;  %v57_v35 = vsub.f32 %v51_v34, %v55_v33 }
 0x140   :  { %v60_v36 = vmul.f32 1.442695, %v57_v35 }
 0x142   :  { %90 = vpow2.f32 %v60_v36 }
 0x14b   :  { %v89_v37 = vpop.eup %88 }
 0x14c   :  { %v62_v38 = vsub.f32 1.0, %v89_v37 }
 0x14e   :  { %v64_v39 = vmul.f32 %v62_v38, %v62_v38 }
 0x14f   :  { %v91_v40 = vpop.eup %90 }
 0x150   :  { %v66_v41 = vmul.f32 -1.0, %v64_v39  ;;  %v63_v42 = vsub.f32 1.0, %v91_v40 }
 0x152   :  { %v68_v43 = vmul.f32 %v66_v41, %v56_v30  ;;  %v65_v44 = vmul.f32 %v63_v42, %v63_v42 }
 0x154   :  { %71 = vst.msk [vmem:[%s134_s2] sm:$0xff] %vm70_vm3, %v68_v43  ;;  %v67_v45 = vmul.f32 -1.0, %v65_v44 }
 0x156   :  { %v69_v46 = vmul.f32 %v67_v45, %v57_v35 }
 0x158   :  { %72 = vst.msk [vmem:[%s134_s2 + $0x8] sm:$0xff] %vm70_vm3, %v69_v46 }

</bundles_post_ra>
